<compile_context>
chip_gen: v7x
topology: tpu7x:2x2x1
jax: 0.10.0
libtpu: 0.0.40
codegen_flags: <defaults>
</compile_context>

<pallas_src>
import jax
import jax.numpy as jnp
from jax.experimental import pallas as pl
from jax.experimental.pallas import tpu as pltpu

LANES = 128


def _round_up(a, m):
    return ((a + m - 1) // m) * m


def simple_nn_kernel(w_ref, b_ref, x_ref, o_ref):
    # w_ref: (2,) f32 SMEM   b_ref: (1,) f32 SMEM
    # x_ref: (2, SB, 128) f32 VMEM   o_ref: (SB, 128) f32 VMEM
    z = x_ref[0] * w_ref[0] + x_ref[1] * w_ref[1] + b_ref[0]   # VPU only
    # sigmoid(z) = 0.5 * (tanh(z/2) + 1): one EUP transcendental per element.
    o_ref[...] = 0.5 * jnp.tanh(0.5 * z) + 0.5


def simple_nn_forward(x, weight, bias, *, max_row_tile=1024):
    """x: (B, 2) f32; weight: (1, 2) f32 (PyTorch layout); bias: (1,) f32."""
    B, IN = x.shape
    OUT = weight.shape[0]
    assert IN == 2 and OUT == 1 and weight.shape == (OUT, IN)

    w = weight.reshape(IN).astype(jnp.float32)    # (2,) scalars -> SMEM
    b = bias.reshape(OUT).astype(jnp.float32)     # (1,) scalar  -> SMEM

    # --- tiling: batch is laid out as (rows, 128) lane-dense, sublane-dense ---
    rows = pl.cdiv(B, LANES)
    row_tile_cap = min(max_row_tile, _round_up(rows, 8))
    n_steps = pl.cdiv(rows, row_tile_cap)
    if n_steps == 1 and rows >= 16:
        n_steps = 2                     # give both v7x TensorCores a shard
    row_tile = _round_up(pl.cdiv(rows, n_steps), 8)
    rows_pad = n_steps * row_tile
    B_pad = rows_pad * LANES

    # (B, 2) -> (2, B_pad) -> (2, rows_pad, 128). The transpose is the only
    # non-free wrapper step (see TODO above); pad + reshape are layout only.
    xt = x.astype(jnp.float32).T
    if B_pad != B:
        xt = jnp.pad(xt, ((0, 0), (0, B_pad - B)))
    xt3 = xt.reshape(IN, rows_pad, LANES)

    smem_spec = pl.BlockSpec(memory_space=pltpu.MemorySpace.SMEM)

    out_pad = pl.pallas_call(
        simple_nn_kernel,
        out_shape=jax.ShapeDtypeStruct((rows_pad, LANES), jnp.float32),
        grid=(n_steps,),
        in_specs=[
            smem_spec,                                               # w
            smem_spec,                                               # b
            pl.BlockSpec((IN, row_tile, LANES), lambda i: (0, i, 0)),  # x tile
        ],
        out_specs=pl.BlockSpec((row_tile, LANES), lambda i: (i, 0)),
        compiler_params=pltpu.CompilerParams(
            dimension_semantics=("parallel",),
            vmem_limit_bytes=32 * 1024 * 1024,   # explicit cap; blocks use ~3 MiB
        ),
    )(w, b, xt3)

    # (rows_pad, 128) -> (B_pad,) -> (B, 1): contiguous reshape + slice.
    return out_pad.reshape(B_pad)[:B].reshape(B, OUT)


if __name__ == "__main__":
    key = jax.random.PRNGKey(0)
    kx1, kx2, kx3, kw, kb = jax.random.split(key, 5)

    IN, OUT = 2, 1
    bound = 1.0 / (IN ** 0.5)
    weight = jax.random.uniform(kw, (OUT, IN), minval=-bound, maxval=bound,
                                dtype=jnp.float32)
    bias = jax.random.uniform(kb, (OUT,), minval=-bound, maxval=bound,
                              dtype=jnp.float32)

    def ref_fn(x):
        return jax.nn.sigmoid(x @ weight.T + bias)

    # Small batch (tests row padding), non-divisible batch, and a batch large
    # enough to exercise the 2-step "parallel" grid path.
    for kx, B in ((kx1, 8), (kx2, 257), (kx3, 4096)):
        x = jax.random.normal(kx, (B, IN), dtype=jnp.float32)
        out = simple_nn_forward(x, weight, bias)
        jax.block_until_ready(out)
        ref = ref_fn(x)
        assert out.shape == (B, OUT)
        assert jnp.allclose(out, ref, atol=1e-5), f"mismatch vs reference (B={B})"

    print("KERNEL_OK")
</pallas_src>

<mosaic_0001>
module attributes {stable_mosaic.version = 11 : i64} {
  func.func @simple_nn_kernel(%arg0: i32, %arg1: memref<2xf32, #tpu.memory_space<smem>>, %arg2: memref<1xf32, #tpu.memory_space<smem>>, %arg3: memref<2x8x128xf32, #tpu.memory_space<vmem>>, %arg4: memref<8x128xf32, #tpu.memory_space<vmem>>) attributes {dimension_semantics = [#tpu.dimension_semantics<parallel>], iteration_bounds = array<i64: 1>, scalar_prefetch = 0 : i64, scratch_operands = 0 : i64, tpu.core_type = #tpu.core_type<tc>, window_params = [{transform_indices = @transform_0, window_bounds = array<i64: 2>}, {transform_indices = @transform_1, window_bounds = array<i64: 1>}, {transform_indices = @transform_2, window_bounds = array<i64: 2, 8, 128>}, {transform_indices = @transform_3, window_bounds = array<i64: 8, 128>}]} {
    %c0 = arith.constant 0 : index
    %c0_0 = arith.constant 0 : index
    %c0_1 = arith.constant 0 : index
    %0 = vector.load %arg3[%c0, %c0_0, %c0_1] : memref<2x8x128xf32, #tpu.memory_space<vmem>>, vector<1x8x128xf32>
    %1 = vector.shape_cast %0 : vector<1x8x128xf32> to vector<8x128xf32>
    %c0_2 = arith.constant 0 : index
    %2 = memref.load %arg1[%c0_2] : memref<2xf32, #tpu.memory_space<smem>>
    %3 = vector.broadcast %2 : f32 to vector<8x128xf32>
    %4 = arith.mulf %1, %3 : vector<8x128xf32>
    %c1 = arith.constant 1 : index
    %c0_3 = arith.constant 0 : index
    %c0_4 = arith.constant 0 : index
    %5 = vector.load %arg3[%c1, %c0_3, %c0_4] : memref<2x8x128xf32, #tpu.memory_space<vmem>>, vector<1x8x128xf32>
    %6 = vector.shape_cast %5 : vector<1x8x128xf32> to vector<8x128xf32>
    %c1_5 = arith.constant 1 : index
    %7 = memref.load %arg1[%c1_5] : memref<2xf32, #tpu.memory_space<smem>>
    %8 = vector.broadcast %7 : f32 to vector<8x128xf32>
    %9 = arith.mulf %6, %8 : vector<8x128xf32>
    %10 = arith.addf %4, %9 : vector<8x128xf32>
    %c0_6 = arith.constant 0 : index
    %11 = memref.load %arg2[%c0_6] : memref<1xf32, #tpu.memory_space<smem>>
    %12 = vector.broadcast %11 : f32 to vector<8x128xf32>
    %13 = arith.addf %10, %12 : vector<8x128xf32>
    %cst = arith.constant 5.000000e-01 : f32
    %14 = vector.broadcast %cst : f32 to vector<8x128xf32>
    %15 = arith.mulf %14, %13 : vector<8x128xf32>
    %16 = math.tanh %15 : vector<8x128xf32>
    %cst_7 = arith.constant 5.000000e-01 : f32
    %17 = vector.broadcast %cst_7 : f32 to vector<8x128xf32>
    %18 = arith.mulf %17, %16 : vector<8x128xf32>
    %cst_8 = arith.constant 5.000000e-01 : f32
    %19 = vector.broadcast %cst_8 : f32 to vector<8x128xf32>
    %20 = arith.addf %18, %19 : vector<8x128xf32>
    %c0_9 = arith.constant 0 : index
    %c0_10 = arith.constant 0 : index
    %21 = vector.load %arg4[%c0_9, %c0_10] : memref<8x128xf32, #tpu.memory_space<vmem>>, vector<8x128xf32>
    tpu.vector_store %arg4[%c0_9, %c0_10], %20 {strides = array<i32>} : memref<8x128xf32, #tpu.memory_space<vmem>>, vector<8x128xf32>,
    return
  }
  func.func @transform_0(%arg0: i32) -> i32 {
    %c0_i32 = arith.constant 0 : i32
    %c0_i32_0 = arith.constant 0 : i32
    return %c0_i32 : i32
  }
  func.func @transform_1(%arg0: i32) -> i32 {
    %c0_i32 = arith.constant 0 : i32
    %c0_i32_0 = arith.constant 0 : i32
    return %c0_i32 : i32
  }
  func.func @transform_2(%arg0: i32) -> (i32, i32, i32) {
    %c0_i32 = arith.constant 0 : i32
    %c0_i32_0 = arith.constant 0 : i32
    %c0_i32_1 = arith.constant 0 : i32
    return %c0_i32, %arg0, %c0_i32_0 : i32, i32, i32
  }
  func.func @transform_3(%arg0: i32) -> (i32, i32) {
    %c0_i32 = arith.constant 0 : i32
    %c0_i32_0 = arith.constant 0 : i32
    return %arg0, %c0_i32 : i32, i32
  }
}

</mosaic_0001>

<bundles_post_ra>
// kernel: tpu_custom_call.1
= control target key start
LH: loop header
LB: loop body
LE: loop exit
PB: predicated region body
PF: predicated region fallthrough
CT: control target
= control target key end

     0   :  { %9 = vsyncpa [#allocation6], 0  ;;  %s202_s0 = inlined_call_operand.vmem [shape: f32[2], index: 0, kind: input, shape index: {}]   ;;  %s203_s1 = inlined_call_operand.<no memory space> [shape: f32[1], index: 1, kind: input, shape index: {}]   ;;  %s204_s2 = inlined_call_operand.hbm [shape: f32[2,8,128], index: 2, kind: input, shape index: {}]   ;;  %s205_s3 = inlined_call_operand.hbm [shape: f32[8,128], index: 3, kind: output, shape index: {}]  }
   0x1   :  { %10 = vsyncpa [#allocation4], 0 }
   0x2   :  { %11 = vsyncpa [#allocation5], 0  ;;  %s18_s14 = sshll.u32 %s202_s0, 4  ;;  %s19_s14 = int_to_ptr.vmem [resolvable:$true] %s18_s14 }
   0x3   :  { %s85_s15 = scalar_lea.vmem %s19_s14, 16  ;;  %p90_p1 = scmp.lt.s32.totalorder %s19_s14, %s19_s14 }
   0x4   :  { %p86_p0 = scmp.ne.s32.totalorder %s19_s14, %s85_s15  ;;  %p91_p2 = scmp.lt.s32.totalorder %s85_s15, %s85_s15 }
   0x6   :  { %p92_p3 = por %p91_p2, %p90_p1 }
   0x8   :  { %p93_p4 = pnand %p92_p3, %p86_p0 }
   0xa   :  { %96 = shalt.err (!%p93_p4)
}
   0xb   :  { %s147_s16 = smov [#allocation3]   ;;  %s148_s17 = smov [#allocation7]  }
   0xc   :  { %21 = dma.vmem_to_smem %s19_s14, 16, %s147_s16, [#allocation6]  }
   0xd   :  { %s29_s18 = sshll.u32 %s148_s17, 4  ;;  %s97_s21 = scalar_lea.hbm %s204_s2, 256  ;;  %s30_s18 = int_to_ptr.vmem [resolvable:$true] %s29_s18 }
   0xe   :  { %p98_p5 = scmp.ne.s32.totalorder %s204_s2, %s97_s21  ;;  %p101_p6 = scmp.lt.u32.totalorder %s97_s21, %s204_s2 }
  0x10   :  { %p103_p7 = pnand %p101_p6, %p98_p5 }
  0x12   :  { %106 = shalt.err (!%p103_p7)
}
  0x13   :  { %s107_s25 = scalar_lea.vmem %s30_s18, 256  ;;  %p112_p9 = scmp.lt.s32.totalorder %s30_s18, %s30_s18 }
  0x14   :  { %p108_p8 = scmp.ne.s32.totalorder %s30_s18, %s107_s25  ;;  %p113_p10 = scmp.lt.s32.totalorder %s107_s25, %s107_s25 }
  0x16   :  { %p114_p11 = por %p113_p10, %p112_p9 }
  0x18   :  { %p115_p12 = pnand %p114_p11, %p108_p8 }
  0x1a   :  { %118 = shalt.err (!%p115_p12)
}
  0x1b   :  { %s149_s26 = smov 128   ;;  %s150_s27 = smov 8  }
  0x1c   :  { %35 = dma.hbm_to_vmem [thread:$0]  %s204_s2, 256, %s30_s18, [#allocation4], %s149_s26, %s149_s26, %s150_s27  }
  0x1d   :  { %141 = dma.done.wait [#allocation6], 16  }
  0x1e   :  { %142 = vsyncadd [#allocation6], 4294967280 }
  0x1f   :  { %143 = dma.done.wait [#allocation4], 256  }
  0x20   :  { %144 = vsyncadd [#allocation4], 4294967040 }
  0x21   :  { %42 = sfence }
  0x22   :  { %s44_s30 = sld [smem:[#allocation3]]  ;;  %s77_s4 = sld [smem:[#allocation3 + $0x1]]  ;;  %v43_v0 = vld [vmem:[#allocation7] sm:$0xff]  ;;  %v48_v1 = vld [vmem:[#allocation7 + $0x8] sm:$0xff]  ;;  %v54_v6 = vstv %s203_s1 }
  0x23   :  { %s151_s2 = smov [#allocation8]  }
  0x24   :  { %s67_s7 = sshll.u32 %s151_s2, 4  ;;  %s68_s7 = int_to_ptr.vmem [resolvable:$true] %s67_s7 }
  0x25   :  { %s119_s8 = scalar_lea.vmem %s68_s7, 128  ;;  %p124_p0 = scmp.lt.s32.totalorder %s68_s7, %s68_s7 }
  0x26   :  { %p120_p13 = scmp.ne.s32.totalorder %s68_s7, %s119_s8  ;;  %p125_p1 = scmp.lt.s32.totalorder %s119_s8, %s119_s8 }
  0x28   :  { %v45_v2 = vstv %s44_s30  ;;  %v50_v3 = vstv %s77_s4  ;;  %p126_p2 = por %p125_p1, %p124_p0 }
  0x29   :  { %v46_v4 = vmul.f32 %v45_v2, %v43_v0  ;;  %v51_v5 = vmul.f32 %v50_v3, %v48_v1 }
  0x2a   :  { %p127_p3 = pnand %p126_p2, %p120_p13 }
  0x2b   :  { %v52_v7 = vadd.f32 %v51_v5, %v46_v4 }
  0x2d   :  { %v55_v8 = vadd.f32 %v54_v6, %v52_v7 }
  0x2f   :  { %v56_v9 = vmul.f32 0.5, %v55_v8 }
  0x31   :  { %83 = vtanh.f32 %v56_v9 }
  0x3b   :  { %v84_v10 = vpop.eup %83 }
  0x3c   :  { %v58_v11 = vmul.f32 0.5, %v84_v10 }
  0x3e   :  { %v59_v12 = vadd.f32 0.5, %v58_v11 }
  0x40   :  { %60 = vst [vmem:[#allocation8] sm:$0xff] %v59_v12 }
  0x41   :  { %130 = shalt.err (!%p127_p3)
}
  0x42   :  { %s131_s10 = scalar_lea.hbm %s205_s3, 128 }
  0x43   :  { %p132_p4 = scmp.ne.s32.totalorder %s205_s3, %s131_s10  ;;  %p135_p5 = scmp.lt.u32.totalorder %s131_s10, %s205_s3 }
  0x45   :  { %p137_p6 = pnand %p135_p5, %p132_p4 }
  0x47   :  { %140 = shalt.err (!%p137_p6)
}
  0x48   :  { %70 = dma.vmem_to_hbm [thread:$0]  %s68_s7, 128, %s205_s3, [#allocation5]  }
  0x49   :  { %145 = dma.done.wait [#allocation5], 128  }
  0x4a   :  { %146 = vsyncadd [#allocation5], 4294967168 }
  0x4b   :  { %74 = vsyncpa [#allocation4], 1 }
  0x4c   :  { %75 = vsyncpa [#allocation5], 1 }
  0x4d   :  { %76 = vsyncpa [#allocation6], 1 }

</bundles_post_ra>
